<compile_context>
chip_gen: v7x
topology: tpu7x:2x2x1
jax: 0.10.0
libtpu: 0.0.40
codegen_flags: <defaults>
</compile_context>

<pallas_src>
import math
from functools import partial

import jax
import jax.numpy as jnp
from jax import lax
from jax.experimental import pallas as pl
from jax.experimental.pallas import tpu as pltpu


def _choose_tile(dim, target, align):
    """Largest tile <= target that divides `dim` and is a multiple of `align`;
    falls back to the full dim (always a legal block) if none exists."""
    if dim <= target:
        return dim
    t = (min(target, dim) // align) * align
    while t >= align:
        if dim % t == 0:
            return t
        t -= align
    return dim


# ----------------------------------------------------------------------------
# Tiled linear: x (M,K) @ w (K,N) with f32 accumulator, K innermost grid axis
# ----------------------------------------------------------------------------
def _matmul_kernel(x_ref, w_ref, o_ref, acc_ref):
    @pl.when(pl.program_id(2) == 0)
    def _init():
        acc_ref[...] = jnp.zeros(acc_ref.shape, acc_ref.dtype)

    acc_ref[...] += jnp.dot(
        x_ref[...], w_ref[...], preferred_element_type=jnp.float32
    )

    @pl.when(pl.program_id(2) == pl.num_programs(2) - 1)
    def _store():
        o_ref[...] = acc_ref[...].astype(o_ref.dtype)


def pallas_linear(x, w, *, tm=256, tn=256, tk=512):
    """x: (M, K), w: (K, N) (already transposed from torch (N, K) layout)."""
    M, K = x.shape
    K2, N = w.shape
    assert K == K2
    tm = _choose_tile(M, tm, 8)
    tn = _choose_tile(N, tn, 128)
    tk = _choose_tile(K, tk, 128)
    grid = (M // tm, N // tn, K // tk)
    return pl.pallas_call(
        _matmul_kernel,
        out_shape=jax.ShapeDtypeStruct((M, N), x.dtype),
        grid=grid,
        in_specs=[
            pl.BlockSpec((tm, tk), lambda i, j, k: (i, k)),
            pl.BlockSpec((tk, tn), lambda i, j, k: (k, j)),
        ],
        out_specs=pl.BlockSpec((tm, tn), lambda i, j, k: (i, j)),
        scratch_shapes=[pltpu.VMEM((tm, tn), jnp.float32)],
        compiler_params=pltpu.CompilerParams(
            dimension_semantics=("parallel", "parallel", "arbitrary")
        ),
        cost_estimate=pl.CostEstimate(
            flops=2 * M * N * K,
            transcendentals=0,
            bytes_accessed=int((M * K + K * N + M * N) * x.dtype.itemsize),
        ),
    )(x, w)


# ----------------------------------------------------------------------------
# Flash attention with causal block skipping and GQA via index_map
# ----------------------------------------------------------------------------
def _flash_attn_kernel(q_ref, k_ref, v_ref, o_ref, m_sc, l_sc, acc_sc,
                       *, scale, group, tq, tkv):
    qi = pl.program_id(2)
    ki = pl.program_id(3)
    g = group
    d = q_ref.shape[-1]

    @pl.when(ki == 0)
    def _init():
        m_sc[...] = jnp.full(m_sc.shape, -jnp.inf, m_sc.dtype)
        l_sc[...] = jnp.zeros(l_sc.shape, l_sc.dtype)
        acc_sc[...] = jnp.zeros(acc_sc.shape, acc_sc.dtype)

    @pl.when(ki <= qi)  # skip fully-masked (above-diagonal) kv blocks entirely
    def _compute():
        # All g q-heads of this kv head, stacked along the row axis.
        q = q_ref[0].reshape(g * tq, d)       # input dtype (bf16-friendly MXU)
        k = k_ref[0, 0]                       # (tkv, d)
        v = v_ref[0, 0]                       # (tkv, d)

        # QK^T on the MXU, f32 accumulation; no f32 upcast of operands.
        s = lax.dot_general(
            q, k, (((1,), (1,)), ((), ())),
            preferred_element_type=jnp.float32,
        ) * scale                              # (g*tq, tkv)

        # Causal mask with absolute positions (only bites on diagonal blocks).
        # Finite mask value avoids NaNs from all-masked rows.
        rows = lax.broadcasted_iota(jnp.int32, (g * tq, tkv), 0)
        cols = lax.broadcasted_iota(jnp.int32, (g * tq, tkv), 1)
        q_pos = qi * tq + (rows % tq)
        k_pos = ki * tkv + cols
        s = jnp.where(k_pos <= q_pos, s, jnp.float32(-1e30))

        # Online softmax update (stats in f32).
        m_prev = m_sc[...]
        m_new = jnp.maximum(m_prev, jnp.max(s, axis=-1, keepdims=True))
        alpha = jnp.exp(m_prev - m_new)
        p = jnp.exp(s - m_new)
        l_sc[...] = alpha * l_sc[...] + jnp.sum(p, axis=-1, keepdims=True)
        acc_sc[...] = alpha * acc_sc[...] + lax.dot_general(
            p.astype(v.dtype), v, (((1,), (0,)), ((), ())),
            preferred_element_type=jnp.float32,
        )
        m_sc[...] = m_new

    @pl.when(ki == pl.num_programs(3) - 1)
    def _finalize():
        # 1/l folded into the epilogue once per q tile (exact).
        o_ref[0] = (acc_sc[...] / l_sc[...]).reshape(g, tq, d).astype(o_ref.dtype)


def pallas_flash_attention(q, k, v, *, scale):
    """q: (B, nh, S, d); k, v: (B, nkv, S, d).  Returns (B, nh, S, d)."""
    B, nh, S, d = q.shape
    nkv = k.shape[1]
    g = nh // nkv
    t = _choose_tile(S, 128, 8)      # tq == tkv, VMEM-friendly on all gens
    nt = S // t
    grid = (B, nkv, nt, nt)

    def q_map(b, j, qi, ki):
        return (b, j, qi, 0)

    def kv_map(b, j, qi, ki):
        # Clamp past-diagonal blocks to the diagonal so the skipped grid steps
        # trigger no new K/V DMA traffic.
        return (b, j, jnp.minimum(ki, qi), 0)

    kern = partial(_flash_attn_kernel, scale=scale, group=g, tq=t, tkv=t)
    return pl.pallas_call(
        kern,
        out_shape=jax.ShapeDtypeStruct((B, nh, S, d), q.dtype),
        grid=grid,
        in_specs=[
            pl.BlockSpec((1, g, t, d), q_map),   # all q heads of one kv group
            pl.BlockSpec((1, 1, t, d), kv_map),  # K: GQA via index_map
            pl.BlockSpec((1, 1, t, d), kv_map),  # V: GQA via index_map
        ],
        out_specs=pl.BlockSpec((1, g, t, d), q_map),
        scratch_shapes=[
            pltpu.VMEM((g * t, 1), jnp.float32),  # running max m
            pltpu.VMEM((g * t, 1), jnp.float32),  # running sum l
            pltpu.VMEM((g * t, d), jnp.float32),  # output accumulator
        ],
        compiler_params=pltpu.CompilerParams(
            dimension_semantics=("parallel", "parallel", "parallel", "arbitrary")
        ),
        cost_estimate=pl.CostEstimate(
            flops=2 * B * nh * S * S * d,            # ~causal halves of 2 matmuls
            transcendentals=B * nh * S * S // 2,
            bytes_accessed=int(
                (2 * B * nh * S * d
                 + 2 * B * nkv * S * d * max(1, (nt + 1) // 2))
                * q.dtype.itemsize
            ),
        ),
    )(q, k, v)


# ----------------------------------------------------------------------------
# Rotary embedding glue (plain JAX elementwise)
# ----------------------------------------------------------------------------
def rotary_cos_sin(position_ids, head_dim, base, dtype):
    inv_freq = 1.0 / (
        base ** (jnp.arange(0, head_dim, 2, dtype=jnp.float32) / head_dim)
    )
    freqs = position_ids.astype(jnp.float32)[:, :, None] * inv_freq[None, None, :]
    emb = jnp.concatenate([freqs, freqs], axis=-1)  # (B, S, d)
    return jnp.cos(emb).astype(dtype), jnp.sin(emb).astype(dtype)


def rotate_half(x):
    half = x.shape[-1] // 2
    return jnp.concatenate([-x[..., half:], x[..., :half]], axis=-1)


def apply_rotary_pos_emb(q, k, cos, sin, unsqueeze_dim=1):
    cos = jnp.expand_dims(cos, unsqueeze_dim)
    sin = jnp.expand_dims(sin, unsqueeze_dim)
    return q * cos + rotate_half(q) * sin, k * cos + rotate_half(k) * sin


def repeat_kv(x, n_rep):  # only used by the pure-JAX reference
    if n_rep == 1:
        return x
    b, hkv, s, d = x.shape
    x = jnp.broadcast_to(x[:, :, None, :, :], (b, hkv, n_rep, s, d))
    return x.reshape(b, hkv * n_rep, s, d)


# ----------------------------------------------------------------------------
# Module forward
# ----------------------------------------------------------------------------
class MistralFlashAttention2MorphPallas:
    def __init__(self, hidden_size, num_heads, num_kv_heads, head_dim,
                 rope_theta=10000.0, key=None):
        self.hidden_size = hidden_size
        self.num_heads = num_heads
        self.num_kv_heads = num_kv_heads
        self.head_dim = head_dim
        self.num_key_value_groups = num_heads // num_kv_heads
        self.rope_theta = rope_theta

        k0, k1, k2, k3 = jax.random.split(key, 4)
        s = 0.02
        # torch nn.Linear weights are (out, in); pre-transpose ONCE here so the
        # matmul kernel consumes (in, out) directly (no per-call transpose).
        self.wq = (s * jax.random.normal(k0, (num_heads * head_dim, hidden_size), jnp.float32)).T
        self.wk = (s * jax.random.normal(k1, (num_kv_heads * head_dim, hidden_size), jnp.float32)).T
        self.wv = (s * jax.random.normal(k2, (num_kv_heads * head_dim, hidden_size), jnp.float32)).T
        self.wo = (s * jax.random.normal(k3, (hidden_size, num_heads * head_dim), jnp.float32)).T

    def __call__(self, hidden_states, position_ids):
        # hidden_states: (B, S, hidden); position_ids: (B, S)
        B, S, H = hidden_states.shape
        nh, nkv, d = self.num_heads, self.num_kv_heads, self.head_dim

        x = hidden_states.reshape(B * S, H)

        # Q/K/V projections on the MXU (tiled, accumulator-based)
        q = pallas_linear(x, self.wq).reshape(B, S, nh, d)
        k = pallas_linear(x, self.wk).reshape(B, S, nkv, d)
        v = pallas_linear(x, self.wv).reshape(B, S, nkv, d)

        # RoPE applied directly in the projection layout (broadcast over heads)
        cos, sin = rotary_cos_sin(position_ids, d, self.rope_theta, hidden_states.dtype)
        q, k = apply_rotary_pos_emb(q, k, cos, sin, unsqueeze_dim=2)
        # TODO(synk): fuse RoPE (per-tile cos/sin + lane roll) into the flash
        # kernel to remove this extra HBM pass over Q and K.

        # (B, S, h, d) -> (B, h, S, d) for the flash kernel; GQA is handled in
        # the kernel index_map, so K/V stay at num_kv_heads (no repeat_kv).
        q = q.transpose(0, 2, 1, 3)
        k = k.transpose(0, 2, 1, 3)
        v = v.transpose(0, 2, 1, 3)

        attn = pallas_flash_attention(q, k, v, scale=1.0 / math.sqrt(d))

        # (B, nh, S, d) -> (B*S, nh*d) -> o_proj
        attn = attn.transpose(0, 2, 1, 3).reshape(B * S, nh * d)
        out = pallas_linear(attn, self.wo).reshape(B, S, H)

        # TODO(synk): KV-cache update / morphkv eviction (past_key_value.update,
        # update_win_queries, cleanup) are stateful cache bookkeeping with no
        # tensor output on the prefill path; not modeled here.
        return out


# ----------------------------------------------------------------------------
# Pure-JAX reference for correctness check
# ----------------------------------------------------------------------------
def ref_forward(mod, hidden_states, position_ids):
    B, S, H = hidden_states.shape
    nh, nkv, d = mod.num_heads, mod.num_kv_heads, mod.head_dim
    x = hidden_states.reshape(B * S, H)
    q = (x @ mod.wq).reshape(B, S, nh, d).transpose(0, 2, 1, 3)
    k = (x @ mod.wk).reshape(B, S, nkv, d).transpose(0, 2, 1, 3)
    v = (x @ mod.wv).reshape(B, S, nkv, d).transpose(0, 2, 1, 3)
    cos, sin = rotary_cos_sin(position_ids, d, mod.rope_theta, hidden_states.dtype)
    q, k = apply_rotary_pos_emb(q, k, cos, sin, unsqueeze_dim=1)
    k = repeat_kv(k, mod.num_key_value_groups)
    v = repeat_kv(v, mod.num_key_value_groups)
    s = jnp.einsum("bhqd,bhkd->bhqk", q, k) / math.sqrt(d)
    mask = jnp.tril(jnp.ones((S, S), bool))
    s = jnp.where(mask[None, None], s, -jnp.inf)
    p = jax.nn.softmax(s.astype(jnp.float32), axis=-1).astype(q.dtype)
    o = jnp.einsum("bhqk,bhkd->bhqd", p, v)
    o = o.transpose(0, 2, 1, 3).reshape(B * S, nh * d)
    return (o @ mod.wo).reshape(B, S, H)


if __name__ == "__main__":
    B, S = 2, 8
    hidden_size = 32
    num_heads = 4
    num_kv_heads = 2
    head_dim = 8

    key = jax.random.PRNGKey(0)
    k_in, k_par = jax.random.split(key)

    mod = MistralFlashAttention2MorphPallas(
        hidden_size, num_heads, num_kv_heads, head_dim, rope_theta=10000.0, key=k_par
    )

    hidden_states = jax.random.normal(k_in, (B, S, hidden_size), jnp.float32)
    position_ids = jnp.broadcast_to(jnp.arange(S, dtype=jnp.int32)[None, :], (B, S))

    out = jax.block_until_ready(mod(hidden_states, position_ids))

    ref = ref_forward(mod, hidden_states, position_ids)
    assert out.shape == (B, S, hidden_size)
    assert bool(jnp.allclose(out, ref, atol=1e-5, rtol=1e-5)), "mismatch vs reference"

    print("KERNEL_OK")
</pallas_src>

<mosaic_0001>
module attributes {stable_mosaic.version = 11 : i64} {
  func.func @_matmul_kernel(%arg0: i32, %arg1: i32, %arg2: i32, %arg3: memref<16x32xf32, #tpu.memory_space<vmem>>, %arg4: memref<32x32xf32, #tpu.memory_space<vmem>>, %arg5: memref<16x32xf32, #tpu.memory_space<vmem>>, %arg6: memref<16x32xf32, #tpu.memory_space<vmem>>) attributes {dimension_semantics = [#tpu.dimension_semantics<parallel>, #tpu.dimension_semantics<parallel>, #tpu.dimension_semantics<arbitrary>], iteration_bounds = array<i64: 1, 1, 1>, scalar_prefetch = 0 : i64, scratch_operands = 1 : i64, tpu.core_type = #tpu.core_type<tc>, window_params = [{transform_indices = @transform_0, window_bounds = array<i64: 16, 32>}, {transform_indices = @transform_1, window_bounds = array<i64: 32, 32>}, {transform_indices = @transform_2, window_bounds = array<i64: 16, 32>}]} {
    %c0_i32 = arith.constant 0 : i32
    %0 = arith.cmpi eq, %arg2, %c0_i32 : i32
    %1 = arith.extui %0 : i1 to i32
    %c0_i32_0 = arith.constant 0 : i32
    %2 = arith.cmpi ne, %1, %c0_i32_0 : i32
    scf.if %2 {
      %cst_10 = arith.constant 0.000000e+00 : f32
      %12 = vector.broadcast %cst_10 : f32 to vector<16x32xf32>
      %c0_11 = arith.constant 0 : index
      %c0_12 = arith.constant 0 : index
      %13 = vector.load %arg6[%c0_11, %c0_12] : memref<16x32xf32, #tpu.memory_space<vmem>>, vector<16x32xf32>
      tpu.vector_store %arg6[%c0_11, %c0_12], %12 {strides = array<i32>} : memref<16x32xf32, #tpu.memory_space<vmem>>, vector<16x32xf32>,
    } else {
    }
    %c0 = arith.constant 0 : index
    %c0_1 = arith.constant 0 : index
    %3 = vector.load %arg6[%c0, %c0_1] : memref<16x32xf32, #tpu.memory_space<vmem>>, vector<16x32xf32>
    %c0_2 = arith.constant 0 : index
    %c0_3 = arith.constant 0 : index
    %4 = vector.load %arg3[%c0_2, %c0_3] : memref<16x32xf32, #tpu.memory_space<vmem>>, vector<16x32xf32>
    %c0_4 = arith.constant 0 : index
    %c0_5 = arith.constant 0 : index
    %5 = vector.load %arg4[%c0_4, %c0_5] : memref<32x32xf32, #tpu.memory_space<vmem>>, vector<32x32xf32>
    %cst = arith.constant dense<0.000000e+00> : vector<16x32xf32>
    %6 = tpu.matmul %4, %5, %cst {dimension_numbers = #tpu.dot_dimension_numbers<[1], [0], [0], [1], [0, 0, 1, 1], [], []>} : vector<16x32xf32>, vector<32x32xf32>, vector<16x32xf32> -> vector<16x32xf32>
    %7 = arith.addf %3, %6 : vector<16x32xf32>
    %c0_6 = arith.constant 0 : index
    %c0_7 = arith.constant 0 : index
    %8 = vector.load %arg6[%c0_6, %c0_7] : memref<16x32xf32, #tpu.memory_space<vmem>>, vector<16x32xf32>
    tpu.vector_store %arg6[%c0_6, %c0_7], %7 {strides = array<i32>} : memref<16x32xf32, #tpu.memory_space<vmem>>, vector<16x32xf32>,
    %c0_i32_8 = arith.constant 0 : i32
    %9 = arith.cmpi eq, %arg2, %c0_i32_8 : i32
    %10 = arith.extui %9 : i1 to i32
    %c0_i32_9 = arith.constant 0 : i32
    %11 = arith.cmpi ne, %10, %c0_i32_9 : i32
    scf.if %11 {
      %c0_10 = arith.constant 0 : index
      %c0_11 = arith.constant 0 : index
      %12 = vector.load %arg6[%c0_10, %c0_11] : memref<16x32xf32, #tpu.memory_space<vmem>>, vector<16x32xf32>
      %c0_12 = arith.constant 0 : index
      %c0_13 = arith.constant 0 : index
      %13 = vector.load %arg5[%c0_12, %c0_13] : memref<16x32xf32, #tpu.memory_space<vmem>>, vector<16x32xf32>
      tpu.vector_store %arg5[%c0_12, %c0_13], %12 {strides = array<i32>} : memref<16x32xf32, #tpu.memory_space<vmem>>, vector<16x32xf32>,
    } else {
    }
    return
  }
  func.func @transform_0(%arg0: i32, %arg1: i32, %arg2: i32) -> (i32, i32) {
    %c0_i32 = arith.constant 0 : i32
    return %arg0, %arg2 : i32, i32
  }
  func.func @transform_1(%arg0: i32, %arg1: i32, %arg2: i32) -> (i32, i32) {
    %c0_i32 = arith.constant 0 : i32
    return %arg2, %arg1 : i32, i32
  }
  func.func @transform_2(%arg0: i32, %arg1: i32, %arg2: i32) -> (i32, i32) {
    %c0_i32 = arith.constant 0 : i32
    return %arg0, %arg1 : i32, i32
  }
}

</mosaic_0001>

<bundles_post_ra>
// kernel: tpu_custom_call.1
= control target key start
LH: loop header
LB: loop body
LE: loop exit
PB: predicated region body
PF: predicated region fallthrough
CT: control target
= control target key end

     0   :  { %7 = vsyncpa [#allocation4], 0  ;;  %s345_s0 = inlined_call_operand.hbm [shape: f32[16,32], index: 0, kind: input, shape index: {}]   ;;  %s346_s1 = inlined_call_operand.hbm [shape: f32[32,32], index: 1, kind: input, shape index: {}]   ;;  %s347_s2 = inlined_call_operand.hbm [shape: f32[16,32], index: 2, kind: output, shape index: {}]  }
   0x1   :  { %8 = vsyncpa [#allocation7], 0 }
   0x2   :  { %9 = vsyncpa [#allocation5], 0  ;;  %s271_s9 = smov [#allocation3]   ;;  %s199_s13 = scalar_lea.hbm %s345_s0, 256 }
   0x3   :  { %s15_s10 = sshll.u32 %s271_s9, 4  ;;  %p200_p0 = scmp.ne.s32.totalorder %s345_s0, %s199_s13  ;;  %s16_s10 = int_to_ptr.vmem [resolvable:$true] %s15_s10 }
   0x4   :  { %p203_p1 = scmp.lt.u32.totalorder %s199_s13, %s345_s0 }
   0x6   :  { %p205_p2 = pnand %p203_p1, %p200_p0 }
   0x8   :  { %208 = shalt.err (!%p205_p2)
}
   0x9   :  { %s209_s18 = scalar_lea.vmem %s16_s10, 256  ;;  %p214_p4 = scmp.lt.s32.totalorder %s16_s10, %s16_s10 }
   0xa   :  { %p210_p3 = scmp.ne.s32.totalorder %s16_s10, %s209_s18  ;;  %p215_p5 = scmp.lt.s32.totalorder %s209_s18, %s209_s18 }
   0xc   :  { %p216_p6 = por %p215_p5, %p214_p4 }
   0xe   :  { %p217_p7 = pnand %p216_p6, %p210_p3 }
  0x10   :  { %220 = shalt.err (!%p217_p7)
}
  0x11   :  { %s272_s19 = smov 128   ;;  %s273_s20 = smov 8  }
  0x12   :  { %21 = dma.hbm_to_vmem [thread:$0]  %s345_s0, 256, %s16_s10, [#allocation4], %s272_s19, %s272_s19, %s273_s20  }
  0x13   :  { %s274_s23 = smov [#allocation6]   ;;  %s221_s27 = scalar_lea.hbm %s346_s1, 512 }
  0x14   :  { %s27_s24 = sshll.u32 %s274_s23, 4  ;;  %p222_p8 = scmp.ne.s32.totalorder %s346_s1, %s221_s27  ;;  %s28_s24 = int_to_ptr.vmem [resolvable:$true] %s27_s24 }
  0x15   :  { %p225_p9 = scmp.lt.u32.totalorder %s221_s27, %s346_s1 }
  0x17   :  { %p227_p10 = pnand %p225_p9, %p222_p8 }
  0x19   :  { %230 = shalt.err (!%p227_p10)
}
  0x1a   :  { %s231_s4 = scalar_lea.vmem %s28_s24, 512  ;;  %p236_p12 = scmp.lt.s32.totalorder %s28_s24, %s28_s24 }
  0x1b   :  { %p232_p11 = scmp.ne.s32.totalorder %s28_s24, %s231_s4  ;;  %p237_p13 = scmp.lt.s32.totalorder %s231_s4, %s231_s4 }
  0x1d   :  { %p238_p0 = por %p237_p13, %p236_p12 }
  0x1f   :  { %p239_p1 = pnand %p238_p0, %p232_p11 }
  0x21   :  { %242 = shalt.err (!%p239_p1)
}
  0x22   :  { %33 = dma.hbm_to_vmem [thread:$0]  %s346_s1, 512, %s28_s24, [#allocation7], %s272_s19, %s272_s19, %s273_s20  }
  0x23   :  { %265 = dma.done.wait [#allocation4], 256  }
  0x24   :  { %266 = vsyncadd [#allocation4], 4294967040 }
  0x25   :  { %267 = dma.done.wait [#allocation7], 512  }
  0x26   :  { %268 = vsyncadd [#allocation7], 4294966784  ;;  %vm44_vm0 = vcmask 261120   ;;  %v275_v0 = vmov 0.0   ;;  %v51_v1 = vld [vmem:[#allocation6] sm:$0xff]  ;;  %v52_v2 = vld [vmem:[#allocation6 + $0x8] sm:$0xff] }
  0x27   :  { %46 = vst.msk [vmem:[#allocation2 + $0x8] sm:$0xff] %vm44_vm0, %v275_v0  ;;  %45 = vst.msk [vmem:[#allocation2] sm:$0xff] %vm44_vm0, %v275_v0  ;;  %v53_v3 = vld [vmem:[#allocation6 + $0x10] sm:$0xff]  ;;  %v185_v4 = vpack.c.bf16 %v52_v2, %v51_v1  ;;  %v54_v5 = vld [vmem:[#allocation6 + $0x18] sm:$0xff]  ;;  %s276_s1 = smov [#allocation8]  }
  0x28   :  { %v49_v6 = vld [vmem:[#allocation3] sm:$0xff]  ;;  %v189_v7 = vpack.c.bf16 %v54_v5, %v53_v3  ;;  %v50_v8 = vld [vmem:[#allocation3 + $0x8] sm:$0xff]  ;;  %s153_s6 = sshll.u32 %s276_s1, 4  ;;  %s154_s6 = int_to_ptr.vmem [resolvable:$true] %s153_s6 }
  0x29   :  { %182 = vmatprep.mubr.msk.f32.mxu0 %vm44_vm0, %v49_v6  ;;  %186 = vmatprep.subr.bf16.mxu0 %v185_v4  ;;  %s243_s7 = scalar_lea.vmem %s154_s6, 256  ;;  %p248_p3 = scmp.lt.s32.totalorder %s154_s6, %s154_s6 }
  0x2a   :  { %188 = vmatpush3.bf16.msra.mxu0 %v185_v4  ;;  %p244_p2 = scmp.ne.s32.totalorder %s154_s6, %s243_s7  ;;  %p249_p4 = scmp.lt.s32.totalorder %s243_s7, %s243_s7 }
  0x2b   :  { %190 = vmatprep.subr.bf16.mxu0 %v189_v7 }
  0x2c   :  { %p250_p5 = por %p249_p4, %p248_p3 }
  0x2e   :  { %192 = vmatpush3.bf16.msra.mxu0 %v189_v7  ;;  %v48_v9 = vld [vmem:[#allocation2 + $0x8] sm:$0xff]  ;;  %v47_v10 = vld [vmem:[#allocation2] sm:$0xff]  ;;  %p251_p6 = pnand %p250_p5, %p244_p2 }
  0x31   :  { %183 = vmatmul.mubr.msk.f32.vlgmr.msra.gmra.mrb[0].mxu0 %vm44_vm0, %v50_v8 }
 0x104   :  { %v184_v11 = vpop.f32.mrb[0].mxu0 }
 0x105   :  { %v138_v12 = vadd.f32 %v184_v11, %v48_v9  ;;  %v128_v13 = vpop.f32.mrb[1].mxu0 }
 0x106   :  { %v137_v14 = vadd.f32 %v128_v13, %v47_v10 }
 0x107   :  { %140 = vst.msk [vmem:[#allocation2 + $0x8] sm:$0xff] %vm44_vm0, %v138_v12 }
 0x108   :  { %139 = vst.msk [vmem:[#allocation2] sm:$0xff] %vm44_vm0, %v137_v14 }
 0x10e   :  { %v145_v15 = vld [vmem:[#allocation2 + $0x8] sm:$0xff] }
 0x10f   :  { %v144_v16 = vld [vmem:[#allocation2] sm:$0xff]  ;;  %147 = vst.msk [vmem:[#allocation8 + $0x8] sm:$0xff] %vm44_vm0, %v145_v15 }
 0x110   :  { %146 = vst.msk [vmem:[#allocation8] sm:$0xff] %vm44_vm0, %v144_v16 }
 0x111   :  { %254 = shalt.err (!%p251_p6)
}
 0x112   :  { %s255_s10 = scalar_lea.hbm %s347_s2, 256 }
 0x113   :  { %p256_p7 = scmp.ne.s32.totalorder %s347_s2, %s255_s10  ;;  %p259_p8 = scmp.lt.u32.totalorder %s255_s10, %s347_s2 }
 0x115   :  { %p261_p9 = pnand %p259_p8, %p256_p7 }
 0x117   :  { %264 = shalt.err (!%p261_p9)
}
 0x118   :  { %159 = dma.vmem_to_hbm [thread:$0]  %s154_s6, 256, %s347_s2, [#allocation5], %s272_s19, %s272_s19, %s273_s20  }
 0x119   :  { %269 = dma.done.wait [#allocation5], 256  }
 0x11a   :  { %270 = vsyncadd [#allocation5], 4294967040 }
 0x11b   :  { %163 = vsyncpa [#allocation4], 1 }
 0x11c   :  { %164 = vsyncpa [#allocation7], 1 }
 0x11d   :  { %165 = vsyncpa [#allocation5], 1 }

</bundles_post_ra>
